<compile_context>
chip_gen: v5e
topology: v5e:2x2
jax: 0.10.0
libtpu: 0.0.40
codegen_flags: <defaults>
</compile_context>

<pallas_src>
import functools
import math
from typing import NamedTuple, Tuple

import numpy as np

import jax
import jax.numpy as jnp
from jax.experimental import pallas as pl
from jax.experimental.pallas import tpu as pltpu


# ----------------------------- helpers --------------------------------------
def _round_up(x: int, m: int) -> int:
    return ((x + m - 1) // m) * m


class LayerGeom(NamedTuple):
    in_dim: int    # real contraction dim
    in_pad: int    # sublane-padded contraction dim (rows in the weight slab)
    out_dim: int   # real output dim
    out_pad: int   # lane-padded output dim (multiple of 128)
    row_off: int   # static row offset of this layer inside the weight slab


# ------------------------- one-time host packing -----------------------------
def pack_mlp_params(weights, biases, weight_dtype=jnp.bfloat16):
    """Pack PyTorch-layout Linear params (w: (out,in), b: (out,)) once.

    Returns (w_slab, b_slab, geom):
      w_slab : (sum_i in_pad_i, max_out_pad) weight_dtype, pre-transposed
      b_slab : (num_layers, 1, max_out_pad)  float32
      geom   : static tuple of LayerGeom (hashable, passed as a static arg)
    """
    num_layers = len(weights)
    itemsize = jnp.dtype(weight_dtype).itemsize
    sublane = 8 * (4 // itemsize)          # 8 for f32, 16 for bf16 (packing)

    geom = []
    off = 0
    for w in weights:
        o_d, i_d = w.shape
        in_pad = _round_up(i_d, sublane)
        out_pad = _round_up(o_d, 128)
        geom.append(LayerGeom(i_d, in_pad, o_d, out_pad, off))
        off += in_pad
    total_rows = off
    max_out = max(g.out_pad for g in geom)

    w_slab = np.zeros((total_rows, max_out), np.float32)
    b_slab = np.zeros((num_layers, 1, max_out), np.float32)
    for i, (g, w, b) in enumerate(zip(geom, weights, biases)):
        w_np = np.asarray(jax.device_get(w), np.float32)
        b_np = np.asarray(jax.device_get(b), np.float32)
        w_slab[g.row_off:g.row_off + g.in_dim, :g.out_dim] = w_np.T  # pre-T
        b_slab[i, 0, :g.out_dim] = b_np

    return (jnp.asarray(w_slab).astype(weight_dtype),
            jnp.asarray(b_slab, jnp.float32),
            tuple(geom))


# --------------------------- kernel body ------------------------------------
def mlp_kernel(x_ref, w_ref, b_ref, o_ref, *, geom):
    """Fused MLP over one row tile.

    x_ref : (TM, in_lane)               f32 padded activation tile
    w_ref : (sum_in_pad, max_out_pad)   bf16 packed, pre-transposed weights
    b_ref : (num_layers, 1, max_out_pad) f32 biases
    o_ref : (TM, out_pad_last)          f32 padded output tile
    """
    num_layers = len(geom)
    x = x_ref[...]                                          # f32 activations
    for i, g in enumerate(geom):
        # Static-offset slice of the packed weight slab (no DMA, no transpose).
        w = w_ref[pl.ds(g.row_off, g.in_pad), :g.out_pad]   # bf16 tile
        xs = x[:, :g.in_pad].astype(w_ref.dtype)            # bf16 MXU operand
        y = jnp.dot(xs, w, preferred_element_type=jnp.float32)
        y = y + b_ref[i, :, :g.out_pad]                     # f32 elementwise
        x = jnp.maximum(y, 0.0) if i < num_layers - 1 else y
    o_ref[...] = x.astype(o_ref.dtype)


# ------------------------------ forward -------------------------------------
@functools.partial(jax.jit, static_argnames=("geom",))
def mlp_pallas(x, w_slab, b_slab, geom: Tuple[LayerGeom, ...]):
    """x: (..., input_dim) f32. w_slab/b_slab/geom from pack_mlp_params."""
    in_dim = geom[0].in_dim
    out_dim = geom[-1].out_dim
    out_pad_last = geom[-1].out_pad
    in_lane = _round_up(max(in_dim, 128), 128)              # lane-dense input

    lead = x.shape[:-1]
    rows = math.prod(lead) if lead else 1

    # Row tiling: "parallel" axis -> megacore sharding + x/out DMA pipelining.
    rows_8 = _round_up(max(rows, 8), 8)
    tm = min(256, rows_8)
    rows_p = _round_up(rows_8, tm)
    grid = (rows_p // tm,)

    # Only the activation slab is padded per call; weights were packed at init.
    x2 = x.reshape(rows, in_dim).astype(jnp.float32)
    x_pad = jnp.zeros((rows_p, in_lane), jnp.float32).at[:rows, :in_dim].set(x2)

    # ---- advisory cost + VMEM sizing ---------------------------------------
    w_bytes = int(w_slab.size) * jnp.dtype(w_slab.dtype).itemsize
    b_bytes = int(b_slab.size) * 4
    x_bytes = rows_p * in_lane * 4
    o_bytes = rows_p * out_pad_last * 4
    flops = 2 * rows * sum(g.in_dim * g.out_dim for g in geom)
    cost = pl.CostEstimate(flops=flops, transcendentals=0,
                           bytes_accessed=x_bytes + w_bytes + b_bytes + o_bytes)

    max_w = max([g.out_pad for g in geom] + [in_lane])
    vmem_est = (2 * tm * in_lane * 4 + 2 * tm * out_pad_last * 4
                + 2 * w_bytes + 2 * b_bytes + 3 * tm * max_w * 4)
    cparams = dict(dimension_semantics=("parallel",))
    if vmem_est > (32 << 20):
        cparams["vmem_limit_bytes"] = int(min(vmem_est + (4 << 20), 128 << 20))

    out_pad = pl.pallas_call(
        functools.partial(mlp_kernel, geom=geom),
        out_shape=jax.ShapeDtypeStruct((rows_p, out_pad_last), jnp.float32),
        grid=grid,
        in_specs=[
            pl.BlockSpec((tm, in_lane), lambda i: (i, 0)),
            pl.BlockSpec(w_slab.shape, lambda i: (0, 0)),      # resident
            pl.BlockSpec(b_slab.shape, lambda i: (0, 0, 0)),   # resident
        ],
        out_specs=pl.BlockSpec((tm, out_pad_last), lambda i: (i, 0)),
        compiler_params=pltpu.CompilerParams(**cparams),
        cost_estimate=cost,
    )(x_pad, w_slab, b_slab)

    out = out_pad[:rows, :out_dim]
    return out.reshape(*lead, out_dim)


# ----------------------- pure-JAX reference (checking) ----------------------
def mlp_reference(x, weights, biases):
    num_layers = len(weights)
    for i, (w, b) in enumerate(zip(weights, biases)):
        y = x @ w.T + b
        x = jnp.maximum(y, 0.0) if i < num_layers - 1 else y
    return x


# --------------------------------- main --------------------------------------
if __name__ == "__main__":
    # Small shapes consistent with the module: tokens of dim 32 through a
    # 3-layer MLP 32 -> 64 -> 64 -> 16, batch=2, seq=8.
    BATCH, SEQ = 2, 8
    INPUT_DIM, HIDDEN_DIM, OUTPUT_DIM, NUM_LAYERS = 32, 64, 16, 3

    root = jax.random.PRNGKey(0)
    kx, kp = jax.random.split(root)
    x = jax.random.normal(kx, (BATCH, SEQ, INPUT_DIM), jnp.float32)

    dims_in = [INPUT_DIM] + [HIDDEN_DIM] * (NUM_LAYERS - 1)
    dims_out = [HIDDEN_DIM] * (NUM_LAYERS - 1) + [OUTPUT_DIM]
    keys = jax.random.split(kp, 2 * NUM_LAYERS)
    weights, biases = [], []
    for i, (n_in, n_out) in enumerate(zip(dims_in, dims_out)):
        s = 1.0 / math.sqrt(n_in)  # PyTorch nn.Linear default init range
        weights.append(
            jax.random.uniform(keys[2 * i], (n_out, n_in), jnp.float32, -s, s))
        biases.append(
            jax.random.uniform(keys[2 * i + 1], (n_out,), jnp.float32, -s, s))

    # One-time packing (model init time), NOT in the per-call path.
    w_slab, b_slab, geom = pack_mlp_params(weights, biases,
                                           weight_dtype=jnp.bfloat16)

    out = mlp_pallas(x, w_slab, b_slab, geom)
    out = jax.block_until_ready(out)

    ref = mlp_reference(x, weights, biases)
    ref = jax.block_until_ready(ref)

    assert out.shape == (BATCH, SEQ, OUTPUT_DIM), out.shape
    # bf16 weights / bf16 MXU operands -> looser tolerance than pure f32.
    assert jnp.allclose(out, ref, atol=2e-2, rtol=2e-2), "mismatch vs reference"
    print("KERNEL_OK")
</pallas_src>

<mosaic_0001>
module attributes {stable_mosaic.version = 11 : i64} {
  func.func @mlp_kernel(%arg0: i32, %arg1: memref<16x128xf32, #tpu.memory_space<vmem>>, %arg2: memref<160x128xbf16, #tpu.memory_space<vmem>>, %arg3: memref<3x1x128xf32, #tpu.memory_space<vmem>>, %arg4: memref<16x128xf32, #tpu.memory_space<vmem>>) attributes {dimension_semantics = [#tpu.dimension_semantics<parallel>], iteration_bounds = array<i64: 1>, scalar_prefetch = 0 : i64, scratch_operands = 0 : i64, tpu.core_type = #tpu.core_type<tc>, window_params = [{transform_indices = @transform_0, window_bounds = array<i64: 16, 128>}, {pipeline_mode = #tpu.pipeline_mode<synchronous>, transform_indices = @transform_1, window_bounds = array<i64: 160, 128>}, {pipeline_mode = #tpu.pipeline_mode<synchronous>, transform_indices = @transform_2, window_bounds = array<i64: 3, 1, 128>}, {transform_indices = @transform_3, window_bounds = array<i64: 16, 128>}]} {
    %c0 = arith.constant 0 : index
    %c0_0 = arith.constant 0 : index
    %0 = vector.load %arg1[%c0, %c0_0] : memref<16x128xf32, #tpu.memory_space<vmem>>, vector<16x128xf32>
    %c0_1 = arith.constant 0 : index
    %c0_2 = arith.constant 0 : index
    %1 = vector.load %arg2[%c0_1, %c0_2] : memref<160x128xbf16, #tpu.memory_space<vmem>>, vector<32x128xbf16>
    %2 = vector.extract_strided_slice %0 {offsets = [0, 0], sizes = [16, 32], strides = [1, 1]} : vector<16x128xf32> to vector<16x32xf32>
    %3 = arith.truncf %2 : vector<16x32xf32> to vector<16x32xbf16>
    %cst = arith.constant dense<0.000000e+00> : vector<16x128xf32>
    %4 = tpu.matmul %3, %1, %cst {dimension_numbers = #tpu.dot_dimension_numbers<[1], [0], [0], [1], [0, 0, 1, 1], [], []>} : vector<16x32xbf16>, vector<32x128xbf16>, vector<16x128xf32> -> vector<16x128xf32>
    %c0_3 = arith.constant 0 : index
    %c0_4 = arith.constant 0 : index
    %c0_5 = arith.constant 0 : index
    %5 = vector.load %arg3[%c0_3, %c0_4, %c0_5] : memref<3x1x128xf32, #tpu.memory_space<vmem>>, vector<1x1x128xf32>
    %6 = vector.shape_cast %5 : vector<1x1x128xf32> to vector<1x128xf32>
    %7 = vector.broadcast %6 : vector<1x128xf32> to vector<16x128xf32>
    %8 = arith.addf %4, %7 : vector<16x128xf32>
    %cst_6 = arith.constant 0.000000e+00 : f32
    %9 = vector.broadcast %cst_6 : f32 to vector<16x128xf32>
    %10 = arith.maximumf %8, %9 : vector<16x128xf32>
    %c32 = arith.constant 32 : index
    %c0_7 = arith.constant 0 : index
    %11 = vector.load %arg2[%c32, %c0_7] : memref<160x128xbf16, #tpu.memory_space<vmem>>, vector<64x128xbf16>
    %12 = vector.extract_strided_slice %10 {offsets = [0, 0], sizes = [16, 64], strides = [1, 1]} : vector<16x128xf32> to vector<16x64xf32>
    %13 = arith.truncf %12 : vector<16x64xf32> to vector<16x64xbf16>
    %cst_8 = arith.constant dense<0.000000e+00> : vector<16x128xf32>
    %14 = tpu.matmul %13, %11, %cst_8 {dimension_numbers = #tpu.dot_dimension_numbers<[1], [0], [0], [1], [0, 0, 1, 1], [], []>} : vector<16x64xbf16>, vector<64x128xbf16>, vector<16x128xf32> -> vector<16x128xf32>
    %c1 = arith.constant 1 : index
    %c0_9 = arith.constant 0 : index
    %c0_10 = arith.constant 0 : index
    %15 = vector.load %arg3[%c1, %c0_9, %c0_10] : memref<3x1x128xf32, #tpu.memory_space<vmem>>, vector<1x1x128xf32>
    %16 = vector.shape_cast %15 : vector<1x1x128xf32> to vector<1x128xf32>
    %17 = vector.broadcast %16 : vector<1x128xf32> to vector<16x128xf32>
    %18 = arith.addf %14, %17 : vector<16x128xf32>
    %cst_11 = arith.constant 0.000000e+00 : f32
    %19 = vector.broadcast %cst_11 : f32 to vector<16x128xf32>
    %20 = arith.maximumf %18, %19 : vector<16x128xf32>
    %c96 = arith.constant 96 : index
    %c0_12 = arith.constant 0 : index
    %21 = vector.load %arg2[%c96, %c0_12] : memref<160x128xbf16, #tpu.memory_space<vmem>>, vector<64x128xbf16>
    %22 = vector.extract_strided_slice %20 {offsets = [0, 0], sizes = [16, 64], strides = [1, 1]} : vector<16x128xf32> to vector<16x64xf32>
    %23 = arith.truncf %22 : vector<16x64xf32> to vector<16x64xbf16>
    %cst_13 = arith.constant dense<0.000000e+00> : vector<16x128xf32>
    %24 = tpu.matmul %23, %21, %cst_13 {dimension_numbers = #tpu.dot_dimension_numbers<[1], [0], [0], [1], [0, 0, 1, 1], [], []>} : vector<16x64xbf16>, vector<64x128xbf16>, vector<16x128xf32> -> vector<16x128xf32>
    %c2 = arith.constant 2 : index
    %c0_14 = arith.constant 0 : index
    %c0_15 = arith.constant 0 : index
    %25 = vector.load %arg3[%c2, %c0_14, %c0_15] : memref<3x1x128xf32, #tpu.memory_space<vmem>>, vector<1x1x128xf32>
    %26 = vector.shape_cast %25 : vector<1x1x128xf32> to vector<1x128xf32>
    %27 = vector.broadcast %26 : vector<1x128xf32> to vector<16x128xf32>
    %28 = arith.addf %24, %27 : vector<16x128xf32>
    %c0_16 = arith.constant 0 : index
    %c0_17 = arith.constant 0 : index
    %29 = vector.load %arg4[%c0_16, %c0_17] : memref<16x128xf32, #tpu.memory_space<vmem>>, vector<16x128xf32>
    tpu.vector_store %arg4[%c0_16, %c0_17], %28 {strides = array<i32>} : memref<16x128xf32, #tpu.memory_space<vmem>>, vector<16x128xf32>,
    return
  }
  func.func @transform_0(%arg0: i32) -> (i32, i32) {
    %c0_i32 = arith.constant 0 : i32
    %c0_i32_0 = arith.constant 0 : i32
    return %arg0, %c0_i32 : i32, i32
  }
  func.func @transform_1(%arg0: i32) -> (i32, i32) {
    %c0_i32 = arith.constant 0 : i32
    %c0_i32_0 = arith.constant 0 : i32
    %c0_i32_1 = arith.constant 0 : i32
    return %c0_i32, %c0_i32_0 : i32, i32
  }
  func.func @transform_2(%arg0: i32) -> (i32, i32, i32) {
    %c0_i32 = arith.constant 0 : i32
    %c0_i32_0 = arith.constant 0 : i32
    %c0_i32_1 = arith.constant 0 : i32
    %c0_i32_2 = arith.constant 0 : i32
    return %c0_i32, %c0_i32_0, %c0_i32_1 : i32, i32, i32
  }
  func.func @transform_3(%arg0: i32) -> (i32, i32) {
    %c0_i32 = arith.constant 0 : i32
    %c0_i32_0 = arith.constant 0 : i32
    return %arg0, %c0_i32 : i32, i32
  }
}

</mosaic_0001>

<bundles_post_ra>
// kernel: mlp_pallas.1
= control target key start
LH: loop header
LB: loop body
LE: loop exit
PB: predicated region body
PF: predicated region fallthrough
CT: control target
= control target key end

     0   :  { %8 = vsyncpa [#allocation3], 0  ;;  %s281_s15 = smov [#allocation2]   ;;  %s282_s17 = smov 64   ;;  %s330_s0 = inlined_call_operand.vmem [shape: f32[16,128], index: 0, kind: input, shape index: {}]   ;;  %s331_s1 = inlined_call_operand.hbm [shape: bf16[160,128], index: 1, kind: input, shape index: {}]   ;;  %s332_s2 = inlined_call_operand.vmem [shape: f32[3,1,128], index: 2, kind: input, shape index: {}]   ;;  %s333_s3 = inlined_call_operand.vmem [shape: f32[16,128], index: 3, kind: output, shape index: {}]  }
   0x1   :  { %s15_s14 = sshll.u32 %s331_s1, 4  ;;  %s17_s16 = sshll.u32 %s281_s15, 4  ;;  %s16_s14 = int_to_ptr.hbm [resolvable:$true] %s15_s14  ;;  %s18_s16 = int_to_ptr.vmem [resolvable:$true] %s17_s16 }
   0x2   :  { %s283_s18 = smov 4  }
   0x3   :  { %23 = dma.hbm_to_vmem [thread:$0]  %s16_s14, 1280, %s18_s16, [#allocation3], %s282_s17, %s282_s17, %s283_s18  }
   0x4   :  { %279 = dma.done.wait [#allocation3], 1280  }
   0x5   :  { %280 = vsyncadd [#allocation3], 4294966016  ;;  %v240_v0 = vld [vmem:[#allocation2 + $0x8] sm:$0xff]  ;;  %v239_v1 = vld [vmem:[#allocation2] sm:$0xff]  ;;  %vm54_vm0 = vcmask 261120   ;;  %vm112_vm1 = vcmask 523264  }
   0x6   :  { %v31_v2 = vld [vmem:[%s330_s0] sm:$0xff]  ;;  %64 = vmatpush.bf16.msra.mxu0 %v240_v0  ;;  %v32_v3 = vld [vmem:[%s330_s0 + $0x8] sm:$0xff]  ;;  %v242_v7 = vld [vmem:[#allocation2 + $0x18] sm:$0xff] }
   0x7   :  { %v37_v4 = vpack.c.bf16 %v32_v3, %v31_v2  ;;  %v244_v5 = vld [vmem:[#allocation2 + $0x28] sm:$0xff]  ;;  %v243_v6 = vld [vmem:[#allocation2 + $0x20] sm:$0xff]  ;;  %v241_v8 = vld [vmem:[#allocation2 + $0x10] sm:$0xff] }
   0x8   :  { %120 = vmatpush.bf16.msra.mxu1 %v244_v5  ;;  %v252_v10 = vld [vmem:[%s332_s2] ss:$0 sm:$0xff]  ;;  %v248_v17 = vld [vmem:[#allocation2 + $0x48] sm:$0xff]  ;;  %v246_v19 = vld [vmem:[#allocation2 + $0x38] sm:$0xff] }
   0x9   :  { %177 = vmatpush.bf16.msra.mxu2 %v248_v17  ;;  %v247_v18 = vld [vmem:[#allocation2 + $0x40] sm:$0xff]  ;;  %v245_v20 = vld [vmem:[#allocation2 + $0x30] sm:$0xff] }
   0xa   :  { %65 = vmatpush.bf16.msra.mxu0 %v239_v1  ;;  %v253_v22 = vld [vmem:[%s332_s2 + $0x1] ss:$0 sm:$0xff]  ;;  %v254_v29 = vld [vmem:[%s332_s2 + $0x2] ss:$0 sm:$0xff] }
   0xc   :  { %121 = vmatpush.bf16.msra.mxu1 %v243_v6 }
   0xd   :  { %202 = vmatmul.msk.bf16.vlgmr.msra.gmra.mxu0 %vm54_vm0, %v37_v4  ;;  %178 = vmatpush.bf16.msra.mxu2 %v247_v18 }
  0x10   :  { %122 = vmatpush.bf16.msra.mxu1 %v242_v7 }
  0x11   :  { %179 = vmatpush.bf16.msra.mxu2 %v246_v19 }
  0x14   :  { %123 = vmatpush.bf16.msra.mxu1 %v241_v8 }
  0x15   :  { %180 = vmatpush.bf16.msra.mxu2 %v245_v20 }
  0x8a   :  { %v67_v9 = vpop.f32.mrf.mxu0 }
  0x8b   :  { %v68_v11 = vadd.f32 %v252_v10, %v67_v9 }
  0x8d   :  { %v72_v14 = vmax.f32 %v68_v11, 0.0 }
  0x92   :  { %v69_v12 = vpop.f32.mrf.mxu0 }
  0x93   :  { %v70_v13 = vadd.f32 %v252_v10, %v69_v12 }
  0x95   :  { %v73_v15 = vmax.f32 %v70_v13, 0.0 }
  0x97   :  { %v82_v16 = vpack.c.bf16 %v73_v15, %v72_v14 }
  0x99   :  { %220 = vmatmul.msk.bf16.vlgmr.msra.gmra.mxu1 %vm112_vm1, %v82_v16 }
 0x116   :  { %v125_v21 = vpop.f32.mrf.mxu1 }
 0x117   :  { %v126_v23 = vadd.f32 %v253_v22, %v125_v21 }
 0x119   :  { %v130_v26 = vmax.f32 %v126_v23, 0.0 }
 0x11e   :  { %v127_v24 = vpop.f32.mrf.mxu1 }
 0x11f   :  { %v128_v25 = vadd.f32 %v253_v22, %v127_v24 }
 0x121   :  { %v131_v27 = vmax.f32 %v128_v25, 0.0 }
 0x123   :  { %v140_v28 = vpack.c.bf16 %v131_v27, %v130_v26 }
 0x125   :  { %238 = vmatmul.msk.bf16.vlgmr.msra.gmra.mxu2 %vm112_vm1, %v140_v28 }
 0x1a8   :  { %v182_v30 = vpop.f32.mrf.mxu2 }
 0x1a9   :  { %v183_v31 = vadd.f32 %v254_v29, %v182_v30 }
 0x1ab   :  { %187 = vst [vmem:[%s333_s3] sm:$0xff] %v183_v31 }
 0x1b0   :  { %v184_v32 = vpop.f32.mrf.mxu2 }
 0x1b1   :  { %v185_v33 = vadd.f32 %v254_v29, %v184_v32 }
 0x1b3   :  { %188 = vst [vmem:[%s333_s3 + $0x8] sm:$0xff] %v185_v33 }
 0x1b4   :  { %193 = vsyncpa [#allocation3], 1 }

</bundles_post_ra>
